<compile_context>
chip_gen: v7x
topology: tpu7x:2x2x1
jax: 0.10.0
libtpu: 0.0.40
codegen_flags: <defaults>
</compile_context>

<pallas_src>
import functools

import jax
import jax.numpy as jnp
from jax import lax
from jax.experimental import pallas as pl
from jax.experimental.pallas import tpu as pltpu


def reglog_kernel(x_ref, wt_ref, b_ref, o_ref):
    # y = bias + pooled @ W^T.  Weight stays (L_pad, S): lane-dense, S on the
    # lane axis; contract last-vs-last ("NT") so Mosaic feeds the MXU directly
    # without materializing an in-VMEM transpose.  f32 accumulation.
    o_ref[...] = b_ref[...] + lax.dot_general(
        x_ref[...], wt_ref[...],
        dimension_numbers=(((1,), (1,)), ((), ())),
        preferred_element_type=jnp.float32)


def prepare_reglog_params(weight, bias, *, dtype=jnp.float32):
    """One-time parameter prep, hoisted out of the forward path.

    weight: (num_labels, S) f32, bias: (num_labels,) f32.
    Returns wt: (L_pad, S) in `dtype` (lane-dense: S on the lane axis, labels
                padded to a multiple of 16 on the sublane axis),
            b:  (1, L_pad) f32.
    dtype=jnp.bfloat16 halves the weight HBM stream at ~1e-2 abs error; the
    f32 default keeps parity with the PyTorch module (the kernel is overhead-
    bound, so the extra bytes are effectively free).
    """
    num_labels, S = weight.shape
    L_pad = ((num_labels + 15) // 16) * 16   # small pad only; never to 128
    wt = jnp.zeros((L_pad, S), dtype).at[:num_labels, :].set(weight.astype(dtype))
    b = jnp.zeros((1, L_pad), jnp.float32).at[0, :num_labels].set(bias)
    return wt, b


@functools.partial(jax.jit, static_argnames=("num_labels", "slice_output"))
def reglog_forward(x, wt, b, *, num_labels, slice_output=True):
    """x: (B, C, H, W) NCHW f32; wt: (L_pad, S) lane-dense weight from
    prepare_reglog_params; b: (1, L_pad) f32.
    Returns (B, num_labels) f32, or the padded (B, L_pad) if slice_output=False."""
    B, C, H, W = x.shape
    pk = ps = 2  # conv=5: AvgPool2d(2, stride=2, padding=0)
    Hout = (H - pk) // ps + 1
    Wout = (W - pk) // ps + 1
    S = C * Hout * Wout
    L_pad, S_w = wt.shape
    assert S_w == S, (wt.shape, S)

    # Pre-pool outside the kernel: XLA fuses crop + reshape + mean into one
    # pass over x, and the kernel's activation DMA drops ~4x versus streaming
    # the 4 window taps.  Flatten order (C, Hout, Wout) matches PyTorch .view().
    xc = x[:, :, :Hout * ps, :Wout * ps]
    pooled = jnp.mean(xc.reshape(B, C, Hout, pk, Wout, pk), axis=(3, 5))
    pooled = pooled.reshape(B, S).astype(wt.dtype)

    # Single grid step: ~0.6 MFLOP of MXU work, nothing to pipeline; any K
    # split would only add ~0.35 us fixed overhead per extra step.
    # (If B ever grows large on v7x, add a leading "parallel" batch grid axis
    #  so the two TensorCores split the activation stream; splitting output
    #  columns at L_pad=16 cannot balance.)
    out = pl.pallas_call(
        reglog_kernel,
        out_shape=jax.ShapeDtypeStruct((B, L_pad), jnp.float32),
        grid=(1,),
        in_specs=[
            pl.BlockSpec((B, S), lambda i: (0, 0)),        # pooled activations
            pl.BlockSpec((L_pad, S), lambda i: (0, 0)),    # lane-dense weight
            pl.BlockSpec((1, L_pad), lambda i: (0, 0)),    # padded bias
        ],
        out_specs=pl.BlockSpec((B, L_pad), lambda i: (0, 0)),
        compiler_params=pltpu.CompilerParams(
            dimension_semantics=("arbitrary",)),
    )(pooled, wt, b)
    return out[:, :num_labels] if slice_output else out


if __name__ == "__main__":
    key = jax.random.PRNGKey(0)
    kx, kw, kb = jax.random.split(key, 3)

    # conv=5 features (AlexNet conv5): (B, 256, 13, 13) -> pooled 9216 features.
    B, C, H, W = 2, 256, 13, 13
    num_labels = 10
    S = C * 6 * 6  # 9216, matches the module's hardcoded s for conv=5

    x = jax.random.normal(kx, (B, C, H, W), dtype=jnp.float32)
    weight = jax.random.normal(kw, (num_labels, S), dtype=jnp.float32) * 0.01
    bias = jax.random.normal(kb, (num_labels,), dtype=jnp.float32) * 0.01

    # Hoisted one-time weight prep (lane-dense (L_pad, S) layout + padded bias).
    wt, b = prepare_reglog_params(weight, bias)   # f32 default for parity

    out = reglog_forward(x, wt, b, num_labels=num_labels)
    jax.block_until_ready(out)

    # Pure-JAX f32 reference of the PyTorch forward for a correctness check.
    pooled_ref = jnp.mean(x[:, :, :12, :12].reshape(B, C, 6, 2, 6, 2), axis=(3, 5))
    ref = jnp.dot(pooled_ref.reshape(B, -1), weight.T,
                  precision=jax.lax.Precision.HIGHEST) + bias
    assert out.shape == (B, num_labels)
    max_err = float(jnp.max(jnp.abs(out - ref)))
    assert jnp.allclose(out, ref, atol=1e-2, rtol=1e-2), max_err

    print("KERNEL_OK")
</pallas_src>

<mosaic_0001>
module attributes {stable_mosaic.version = 11 : i64} {
  func.func @reglog_kernel(%arg0: i32, %arg1: memref<2x9216xf32, #tpu.memory_space<vmem>>, %arg2: memref<16x9216xf32, #tpu.memory_space<vmem>>, %arg3: memref<1x16xf32, #tpu.memory_space<vmem>>, %arg4: memref<2x16xf32, #tpu.memory_space<vmem>>) attributes {dimension_semantics = [#tpu.dimension_semantics<arbitrary>], iteration_bounds = array<i64: 1>, scalar_prefetch = 0 : i64, scratch_operands = 0 : i64, tpu.core_type = #tpu.core_type<tc>, window_params = [{pipeline_mode = #tpu.pipeline_mode<synchronous>, transform_indices = @transform_0, window_bounds = array<i64: 2, 9216>}, {pipeline_mode = #tpu.pipeline_mode<synchronous>, transform_indices = @transform_1, window_bounds = array<i64: 16, 9216>}, {pipeline_mode = #tpu.pipeline_mode<synchronous>, transform_indices = @transform_2, window_bounds = array<i64: 1, 16>}, {pipeline_mode = #tpu.pipeline_mode<synchronous>, transform_indices = @transform_3, window_bounds = array<i64: 2, 16>}]} {
    %c0 = arith.constant 0 : index
    %c0_0 = arith.constant 0 : index
    %0 = vector.load %arg3[%c0, %c0_0] : memref<1x16xf32, #tpu.memory_space<vmem>>, vector<1x16xf32>
    %c0_1 = arith.constant 0 : index
    %c0_2 = arith.constant 0 : index
    %1 = vector.load %arg1[%c0_1, %c0_2] : memref<2x9216xf32, #tpu.memory_space<vmem>>, vector<2x9216xf32>
    %c0_3 = arith.constant 0 : index
    %c0_4 = arith.constant 0 : index
    %2 = vector.load %arg2[%c0_3, %c0_4] : memref<16x9216xf32, #tpu.memory_space<vmem>>, vector<16x9216xf32>
    %cst = arith.constant dense<0.000000e+00> : vector<2x16xf32>
    %3 = tpu.matmul %1, %2, %cst {dimension_numbers = #tpu.dot_dimension_numbers<[1], [1], [0], [0], [0, 0, 1, 0], [], []>} : vector<2x9216xf32>, vector<16x9216xf32>, vector<2x16xf32> -> vector<2x16xf32>
    %4 = vector.broadcast %0 : vector<1x16xf32> to vector<2x16xf32>
    %5 = arith.addf %4, %3 : vector<2x16xf32>
    %c0_5 = arith.constant 0 : index
    %c0_6 = arith.constant 0 : index
    %6 = vector.load %arg4[%c0_5, %c0_6] : memref<2x16xf32, #tpu.memory_space<vmem>>, vector<2x16xf32>
    tpu.vector_store %arg4[%c0_5, %c0_6], %5 {strides = array<i32>} : memref<2x16xf32, #tpu.memory_space<vmem>>, vector<2x16xf32>,
    return
  }
  func.func @transform_0(%arg0: i32) -> (i32, i32) {
    %c0_i32 = arith.constant 0 : i32
    %c0_i32_0 = arith.constant 0 : i32
    %c0_i32_1 = arith.constant 0 : i32
    return %c0_i32, %c0_i32_0 : i32, i32
  }
  func.func @transform_1(%arg0: i32) -> (i32, i32) {
    %c0_i32 = arith.constant 0 : i32
    %c0_i32_0 = arith.constant 0 : i32
    %c0_i32_1 = arith.constant 0 : i32
    return %c0_i32, %c0_i32_0 : i32, i32
  }
  func.func @transform_2(%arg0: i32) -> (i32, i32) {
    %c0_i32 = arith.constant 0 : i32
    %c0_i32_0 = arith.constant 0 : i32
    %c0_i32_1 = arith.constant 0 : i32
    return %c0_i32, %c0_i32_0 : i32, i32
  }
  func.func @transform_3(%arg0: i32) -> (i32, i32) {
    %c0_i32 = arith.constant 0 : i32
    %c0_i32_0 = arith.constant 0 : i32
    %c0_i32_1 = arith.constant 0 : i32
    return %c0_i32, %c0_i32_0 : i32, i32
  }
}

</mosaic_0001>

<bundles_post_ra>
// kernel: reglog_forward.1
= control target key start
LH: loop header
LB: loop body
LE: loop exit
PB: predicated region body
PF: predicated region fallthrough
CT: control target
= control target key end

     0   :  { %v200_v3 = vlaneseq  ;;  %v3306_v8 = vmov 1983009808   ;;  %s3867_s0 = inlined_call_operand.vmem [shape: f32[2,9216], index: 0, kind: input, shape index: {}]   ;;  %s3868_s1 = inlined_call_operand.vmem [shape: f32[16,9216], index: 1, kind: input, shape index: {}]   ;;  %s3869_s2 = inlined_call_operand.vmem [shape: f32[1,16], index: 2, kind: input, shape index: {}]   ;;  %s3870_s3 = inlined_call_operand.hbm [shape: f32[2,16], index: 3, kind: output, shape index: {}]  }
   0x1   :  { %v35_v0 = vld [vmem:[%s3868_s1 + $0x8] sm:$0xff]  ;;  %v34_v2 = vld [vmem:[%s3868_s1] sm:$0xff]  ;;  %v37_v6 = vld [vmem:[%s3868_s1 + $0x18] sm:$0xff]  ;;  %v198_v9 = vunpack.c.l.s4 %v3306_v8 }
   0x2   :  { %v107_v1 = vld [vmem:[%s3868_s1 + $0x248] sm:$0xff]  ;;  %v106_v5 = vld [vmem:[%s3868_s1 + $0x240] sm:$0xff]  ;;  %v109_v7 = vld [vmem:[%s3868_s1 + $0x258] sm:$0xff]  ;;  %v201_v15 = vshrl.u32 %v200_v3, 7 }
   0x3   :  { %v3118_v4 = vpack.c.bf16 %v107_v1, %v35_v0  ;;  %v3120_v10 = vpack.c.bf16 %v106_v5, %v34_v2  ;;  %v3122_v11 = vpack.c.bf16 %v109_v7, %v37_v6  ;;  %v36_v12 = vld [vmem:[%s3868_s1 + $0x10] sm:$0xff]  ;;  %v16_v14 = vld [vmem:[%s3867_s0] sm:$0xff]  ;;  %v199_v17 = vunpack.c.0.s8 %v198_v9  ;;  %v39_v19 = vld [vmem:[%s3868_s1 + $0x28] sm:$0xff] }
   0x4   :  { %v108_v13 = vld [vmem:[%s3868_s1 + $0x250] sm:$0xff]  ;;  %v196_v18 = vcombine.high %v16_v14, %v16_v14  ;;  %v111_v20 = vld [vmem:[%s3868_s1 + $0x268] sm:$0xff]  ;;  %v41_v22 = vld [vmem:[%s3868_s1 + $0x38] sm:$0xff] }
   0x5   :  { %3119 = vmatprep.subr.bf16.mxu0 %v3118_v4  ;;  %v3124_v16 = vpack.c.bf16 %v108_v13, %v36_v12  ;;  %3123 = vmatprep.subr.bf16.mxu1 %v3122_v11  ;;  %v3126_v21 = vpack.c.bf16 %v111_v20, %v39_v19  ;;  %v113_v23 = vld [vmem:[%s3868_s1 + $0x278] sm:$0xff]  ;;  %v3367_v24 = vsub.s32 %v199_v17, %v201_v15  ;;  %v38_v25 = vld [vmem:[%s3868_s1 + $0x20] sm:$0xff]  ;;  %v17_v27 = vld [vmem:[%s3867_s0 + $0x8] sm:$0xff] }
   0x6   :  { %3121 = vmatpush1.bf16.xpose.msra.mxu0 %v3120_v10  ;;  %v3130_v26 = vpack.c.bf16 %v113_v23, %v41_v22  ;;  %v110_v28 = vld [vmem:[%s3868_s1 + $0x260] sm:$0xff]  ;;  %v40_v29 = vld [vmem:[%s3868_s1 + $0x30] sm:$0xff]  ;;  %v213_v31 = vcombine.high %v17_v27, %v17_v27  ;;  %v43_v35 = vld [vmem:[%s3868_s1 + $0x48] sm:$0xff] }
   0x7   :  { %3125 = vmatpush1.bf16.xpose.msra.mxu1 %v3124_v16  ;;  %3127 = vmatprep.subr.bf16.mxu0 %v3126_v21  ;;  %v112_v30 = vld [vmem:[%s3868_s1 + $0x270] sm:$0xff]  ;;  %v203_v32 = vrot.slane %v16_v14, %v3367_v24  ;;  %v210_v33 = vrot.slane %v196_v18, %v3367_v24  ;;  %v220_v34 = vrot.slane %v17_v27, %v3367_v24  ;;  %v115_v36 = vld [vmem:[%s3868_s1 + $0x288] sm:$0xff]  ;;  %v45_v38 = vld [vmem:[%s3868_s1 + $0x58] sm:$0xff] }
   0x8   :  { %3131 = vmatprep.subr.bf16.mxu1 %v3130_v26  ;;  %v227_v37 = vrot.slane %v213_v31, %v3367_v24  ;;  %v117_v39 = vld [vmem:[%s3868_s1 + $0x298] sm:$0xff]  ;;  %v18_v40 = vld [vmem:[%s3867_s0 + $0x10] sm:$0xff]  ;;  %v3128_v43 = vpack.c.bf16 %v110_v28, %v38_v25  ;;  %v3132_v44 = vpack.c.bf16 %v112_v30, %v40_v29  ;;  %v3134_v46 = vpack.c.bf16 %v115_v36, %v43_v35  ;;  %v42_v50 = vld [vmem:[%s3868_s1 + $0x40] sm:$0xff] }
   0x9   :  { %v211_v41 = vcombine.high %v203_v32, %v203_v32  ;;  %v212_v42 = vcombine.high %v210_v33, %v210_v33  ;;  %v228_v45 = vcombine.high %v220_v34, %v220_v34  ;;  %v3138_v48 = vpack.c.bf16 %v117_v39, %v45_v38  ;;  %v114_v51 = vld [vmem:[%s3868_s1 + $0x280] sm:$0xff]  ;;  %v44_v52 = vld [vmem:[%s3868_s1 + $0x50] sm:$0xff]  ;;  %v47_v55 = vld [vmem:[%s3868_s1 + $0x68] sm:$0xff] }
   0xa   :  { %v229_v47 = vcombine.high %v227_v37, %v227_v37  ;;  %v230_v49 = vcombine.high %v18_v40, %v18_v40  ;;  %v116_v53 = vld [vmem:[%s3868_s1 + $0x290] sm:$0xff]  ;;  %v237_v54 = vrot.slane %v18_v40, %v3367_v24  ;;  %v119_v56 = vld [vmem:[%s3868_s1 + $0x2a8] sm:$0xff]  ;;  %v49_v58 = vld [vmem:[%s3868_s1 + $0x78] sm:$0xff]  ;;  %v3136_v61 = vpack.c.bf16 %v114_v51, %v42_v50 }
   0xb   :  { %638 = vmatprep.mubr.f32.mxu0 %v211_v41  ;;  %708 = vmatprep.mubr.f32.mxu1 %v212_v42  ;;  %v121_v59 = vld [vmem:[%s3868_s1 + $0x2b8] sm:$0xff]  ;;  %v3140_v62 = vpack.c.bf16 %v116_v53, %v44_v52  ;;  %v3142_v0 = vpack.c.bf16 %v119_v56, %v47_v55  ;;  %v46_v4 = vld [vmem:[%s3868_s1 + $0x60] sm:$0xff]  ;;  %v48_v6 = vld [vmem:[%s3868_s1 + $0x70] sm:$0xff] }
   0xc   :  { %v244_v57 = vrot.slane %v230_v49, %v3367_v24  ;;  %v19_v60 = vld [vmem:[%s3867_s0 + $0x18] sm:$0xff]  ;;  %v245_v63 = vcombine.high %v237_v54, %v237_v54  ;;  %v3146_v2 = vpack.c.bf16 %v121_v59, %v49_v58  ;;  %v118_v5 = vld [vmem:[%s3868_s1 + $0x2a0] sm:$0xff]  ;;  %v120_v7 = vld [vmem:[%s3868_s1 + $0x2b0] sm:$0xff] }
   0xd   :  { %639 = vmatmul.mubr.f32.vlgmr.msra.gmra.mrb[0].mxu0 %v203_v32  ;;  %v247_v3 = vcombine.high %v19_v60, %v19_v60  ;;  %v254_v8 = vrot.slane %v19_v60, %v3367_v24  ;;  %v51_v9 = vld [vmem:[%s3868_s1 + $0x88] sm:$0xff]  ;;  %v53_v12 = vld [vmem:[%s3868_s1 + $0x98] sm:$0xff]  ;;  %v20_v14 = vld [vmem:[%s3867_s0 + $0x20] sm:$0xff]  ;;  %v3144_v15 = vpack.c.bf16 %v118_v5, %v46_v4  ;;  %v3148_v16 = vpack.c.bf16 %v120_v7, %v48_v6 }
   0xe   :  { %709 = vmatmul.mubr.f32.vlgmr.msra.gmra.mrb[0].mxu1 %v210_v33  ;;  %3129 = vmatpush1.bf16.xpose.msra.mxu0 %v3128_v43  ;;  %v246_v1 = vcombine.high %v244_v57, %v244_v57  ;;  %v123_v10 = vld [vmem:[%s3868_s1 + $0x2c8] sm:$0xff]  ;;  %v125_v13 = vld [vmem:[%s3868_s1 + $0x2d8] sm:$0xff]  ;;  %v264_v21 = vcombine.high %v20_v14, %v20_v14  ;;  %v50_v22 = vld [vmem:[%s3868_s1 + $0x80] sm:$0xff]  ;;  %v271_v27 = vrot.slane %v20_v14, %v3367_v24 }
   0xf   :  { %3133 = vmatpush1.bf16.xpose.msra.mxu1 %v3132_v44  ;;  %778 = vmatprep.mubr.f32.mxu0 %v228_v45  ;;  %v261_v11 = vrot.slane %v247_v3, %v3367_v24  ;;  %v262_v17 = vcombine.high %v254_v8, %v254_v8  ;;  %v3150_v18 = vpack.c.bf16 %v123_v10, %v51_v9  ;;  %v122_v23 = vld [vmem:[%s3868_s1 + $0x2c0] sm:$0xff]  ;;  %v52_v25 = vld [vmem:[%s3868_s1 + $0x90] sm:$0xff]  ;;  %v55_v28 = vld [vmem:[%s3868_s1 + $0xa8] sm:$0xff] }
  0x10   :  { %3135 = vmatprep.subr.bf16.mxu0 %v3134_v46  ;;  %848 = vmatprep.mubr.f32.mxu1 %v229_v47  ;;  %v3154_v20 = vpack.c.bf16 %v125_v13, %v53_v12  ;;  %v124_v26 = vld [vmem:[%s3868_s1 + $0x2d0] sm:$0xff]  ;;  %v127_v29 = vld [vmem:[%s3868_s1 + $0x2e8] sm:$0xff]  ;;  %v278_v30 = vrot.slane %v264_v21, %v3367_v24  ;;  %v57_v31 = vld [vmem:[%s3868_s1 + $0xb8] sm:$0xff]  ;;  %v279_v36 = vcombine.high %v271_v27, %v271_v27 }
  0x11   :  { %3139 = vmatprep.subr.bf16.mxu1 %v3138_v48  ;;  %v263_v19 = vcombine.high %v261_v11, %v261_v11  ;;  %v129_v32 = vld [vmem:[%s3868_s1 + $0x2f8] sm:$0xff]  ;;  %v21_v33 = vld [vmem:[%s3867_s0 + $0x28] sm:$0xff]  ;;  %v3156_v35 = vpack.c.bf16 %v124_v26, %v52_v25  ;;  %v54_v41 = vld [vmem:[%s3868_s1 + $0xa0] sm:$0xff] }
  0x12   :  { %v280_v38 = vcombine.high %v278_v30, %v278_v30  ;;  %v3162_v39 = vpack.c.bf16 %v129_v32, %v57_v31  ;;  %v281_v40 = vcombine.high %v21_v33, %v21_v33  ;;  %v126_v42 = vld [vmem:[%s3868_s1 + $0x2e0] sm:$0xff]  ;;  %v56_v43 = vld [vmem:[%s3868_s1 + $0xb0] sm:$0xff]  ;;  %v288_v45 = vrot.slane %v21_v33, %v3367_v24  ;;  %v59_v46 = vld [vmem:[%s3868_s1 + $0xc8] sm:$0xff] }
  0x13   :  { %v128_v44 = vld [vmem:[%s3868_s1 + $0x2f0] sm:$0xff]  ;;  %v131_v47 = vld [vmem:[%s3868_s1 + $0x308] sm:$0xff]  ;;  %v61_v49 = vld [vmem:[%s3868_s1 + $0xd8] sm:$0xff]  ;;  %v3160_v52 = vpack.c.bf16 %v126_v42, %v54_v41 }
  0x14   :  { %v295_v48 = vrot.slane %v281_v40, %v3367_v24  ;;  %v133_v50 = vld [vmem:[%s3868_s1 + $0x318] sm:$0xff]  ;;  %v22_v51 = vld [vmem:[%s3867_s0 + $0x30] sm:$0xff]  ;;  %v3164_v53 = vpack.c.bf16 %v128_v44, %v56_v43  ;;  %v3166_v55 = vpack.c.bf16 %v131_v47, %v59_v46  ;;  %v58_v59 = vld [vmem:[%s3868_s1 + $0xc0] sm:$0xff] }
  0x15   :  { %779 = vmatmul.mubr.f32.vlgmr.msra.gmra.mrb[2].mxu0 %v220_v34  ;;  %v3152_v34 = vpack.c.bf16 %v122_v23, %v50_v22  ;;  %v298_v58 = vcombine.high %v22_v51, %v22_v51  ;;  %v130_v60 = vld [vmem:[%s3868_s1 + $0x300] sm:$0xff]  ;;  %v65_v3 = vld [vmem:[%s3868_s1 + $0xf8] sm:$0xff] }
  0x16   :  { %849 = vmatmul.mubr.f32.vlgmr.msra.gmra.mrb[2].mxu1 %v227_v37  ;;  %3137 = vmatpush1.bf16.xpose.msra.mxu0 %v3136_v61  ;;  %v3158_v37 = vpack.c.bf16 %v127_v29, %v55_v28  ;;  %v297_v56 = vcombine.high %v295_v48, %v295_v48  ;;  %v60_v61 = vld [vmem:[%s3868_s1 + $0xd0] sm:$0xff]  ;;  %v137_v4 = vld [vmem:[%s3868_s1 + $0x338] sm:$0xff]  ;;  %v3168_v6 = vpack.c.bf16 %v130_v60, %v58_v59  ;;  %v62_v13 = vld [vmem:[%s3868_s1 + $0xe0] sm:$0xff] }
  0x17   :  { %3141 = vmatpush1.bf16.xpose.msra.mxu1 %v3140_v62  ;;  %918 = vmatprep.mubr.f32.mxu0 %v245_v63  ;;  %v132_v62 = vld [vmem:[%s3868_s1 + $0x310] sm:$0xff]  ;;  %v305_v63 = vrot.slane %v22_v51, %v3367_v24  ;;  %v23_v5 = vld [vmem:[%s3867_s0 + $0x38] sm:$0xff]  ;;  %v134_v14 = vld [vmem:[%s3868_s1 + $0x320] sm:$0xff] }
  0x18   :  { %3143 = vmatprep.subr.bf16.mxu0 %v3142_v0  ;;  %988 = vmatprep.mubr.f32.mxu1 %v246_v1  ;;  %v63_v0 = vld [vmem:[%s3868_s1 + $0xe8] sm:$0xff]  ;;  %v3172_v7 = vpack.c.bf16 %v132_v62, %v60_v61  ;;  %v315_v12 = vcombine.high %v23_v5, %v23_v5 }
  0x19   :  { %3147 = vmatprep.subr.bf16.mxu1 %v3146_v2  ;;  %v135_v1 = vld [vmem:[%s3868_s1 + $0x328] sm:$0xff]  ;;  %v312_v2 = vrot.slane %v298_v58, %v3367_v24 }
  0x1a   :  { %v3174_v9 = vpack.c.bf16 %v135_v1, %v63_v0 }
  0x1b   :  { %v314_v10 = vcombine.high %v312_v2, %v312_v2 }
  0x1d   :  { %919 = vmatmul.mubr.f32.vlgmr.msra.gmra.mrb[4].mxu0 %v237_v54  ;;  %v296_v54 = vcombine.high %v288_v45, %v288_v45 }
  0x1e   :  { %989 = vmatmul.mubr.f32.vlgmr.msra.gmra.mrb[4].mxu1 %v244_v57  ;;  %3145 = vmatpush1.bf16.xpose.msra.mxu0 %v3144_v15  ;;  %v3170_v57 = vpack.c.bf16 %v133_v50, %v61_v49  ;;  %v64_v15 = vld [vmem:[%s3868_s1 + $0xf0] sm:$0xff] }
  0x1f   :  { %3149 = vmatpush1.bf16.xpose.msra.mxu1 %v3148_v16  ;;  %1058 = vmatprep.mubr.f32.mxu0 %v262_v17  ;;  %v136_v16 = vld [vmem:[%s3868_s1 + $0x330] sm:$0xff]  ;;  %v322_v17 = vrot.slane %v23_v5, %v3367_v24 }
  0x20   :  { %3151 = vmatprep.subr.bf16.mxu0 %v3150_v18  ;;  %1128 = vmatprep.mubr.f32.mxu1 %v263_v19 }
  0x21   :  { %3155 = vmatprep.subr.bf16.mxu1 %v3154_v20 }
  0x25   :  { %1059 = vmatmul.mubr.f32.vlgmr.msra.gmra.mrb[6].mxu0 %v254_v8  ;;  %v313_v8 = vcombine.high %v305_v63, %v305_v63 }
  0x26   :  { %1129 = vmatmul.mubr.f32.vlgmr.msra.gmra.mrb[6].mxu1 %v261_v11  ;;  %3153 = vmatpush1.bf16.xpose.msra.mxu0 %v3152_v34  ;;  %v3178_v11 = vpack.c.bf16 %v137_v4, %v65_v3 }
  0x27   :  { %3157 = vmatpush1.bf16.xpose.msra.mxu1 %v3156_v35  ;;  %1198 = vmatprep.mubr.f32.mxu0 %v279_v36 }
  0x28   :  { %3159 = vmatprep.subr.bf16.mxu0 %v3158_v37  ;;  %1268 = vmatprep.mubr.f32.mxu1 %v280_v38 }
  0x29   :  { %3163 = vmatprep.subr.bf16.mxu1 %v3162_v39 }
  0x2d   :  { %1199 = vmatmul.mubr.f32.vlgmr.msra.gmra.mrb[8].mxu0 %v271_v27 }
  0x2e   :  { %1269 = vmatmul.mubr.f32.vlgmr.msra.gmra.mrb[8].mxu1 %v278_v30  ;;  %3161 = vmatpush1.bf16.xpose.msra.mxu0 %v3160_v52 }
  0x2f   :  { %3165 = vmatpush1.bf16.xpose.msra.mxu1 %v3164_v53  ;;  %1338 = vmatprep.mubr.f32.mxu0 %v296_v54 }
  0x30   :  { %3167 = vmatprep.subr.bf16.mxu0 %v3166_v55  ;;  %1408 = vmatprep.mubr.f32.mxu1 %v297_v56 }
  0x31   :  { %3171 = vmatprep.subr.bf16.mxu1 %v3170_v57 }
  0x35   :  { %1339 = vmatmul.mubr.f32.vlgmr.msra.gmra.mrb[10].mxu0 %v288_v45 }
  0x36   :  { %1409 = vmatmul.mubr.f32.vlgmr.msra.gmra.mrb[10].mxu1 %v295_v48  ;;  %3169 = vmatpush1.bf16.xpose.msra.mxu0 %v3168_v6 }
  0x37   :  { %3173 = vmatpush1.bf16.xpose.msra.mxu1 %v3172_v7  ;;  %1478 = vmatprep.mubr.f32.mxu0 %v313_v8 }
  0x38   :  { %3175 = vmatprep.subr.bf16.mxu0 %v3174_v9 }
  0x39   :  { %8 = vsyncpa [#allocation3], 0  ;;  %1548 = vmatprep.mubr.f32.mxu1 %v314_v10  ;;  %3179 = vmatprep.subr.bf16.mxu1 %v3178_v11  ;;  %v67_v18 = vld [vmem:[%s3868_s1 + $0x108] sm:$0xff]  ;;  %v329_v20 = vrot.slane %v315_v12, %v3367_v24  ;;  %v69_v21 = vld [vmem:[%s3868_s1 + $0x118] sm:$0xff]  ;;  %v3176_v25 = vpack.c.bf16 %v134_v14, %v62_v13  ;;  %v3180_v26 = vpack.c.bf16 %v136_v16, %v64_v15  ;;  %s3307_s12 = smov [#allocation2]   ;;  %vm3101_vm0 = vcmask 123904  }
  0x3a   :  { %v139_v19 = vld [vmem:[%s3868_s1 + $0x348] sm:$0xff]  ;;  %v141_v22 = vld [vmem:[%s3868_s1 + $0x358] sm:$0xff]  ;;  %v24_v23 = vld [vmem:[%s3867_s0 + $0x40] sm:$0xff]  ;;  %v330_v27 = vcombine.high %v322_v17, %v322_v17  ;;  %s3109_s13 = sshll.u32 %s3307_s12, 4  ;;  %s3110_s13 = int_to_ptr.vmem [resolvable:$true] %s3109_s13 }
  0x3b   :  { %v3182_v28 = vpack.c.bf16 %v139_v19, %v67_v18  ;;  %v331_v29 = vcombine.high %v329_v20, %v329_v20  ;;  %v3186_v30 = vpack.c.bf16 %v141_v22, %v69_v21  ;;  %v332_v31 = vcombine.high %v24_v23, %v24_v23  ;;  %v66_v32 = vld [vmem:[%s3868_s1 + $0x100] sm:$0xff]  ;;  %v68_v34 = vld [vmem:[%s3868_s1 + $0x110] sm:$0xff]  ;;  %v71_v37 = vld [vmem:[%s3868_s1 + $0x128] sm:$0xff]  ;;  %s3282_s14 = scalar_lea.vmem %s3110_s13, 32  ;;  %p3287_p1 = scmp.lt.s32.totalorder %s3110_s13, %s3110_s13 }
  0x3c   :  { %v138_v33 = vld [vmem:[%s3868_s1 + $0x340] sm:$0xff]  ;;  %v140_v35 = vld [vmem:[%s3868_s1 + $0x350] sm:$0xff]  ;;  %v339_v36 = vrot.slane %v24_v23, %v3367_v24  ;;  %v143_v38 = vld [vmem:[%s3868_s1 + $0x368] sm:$0xff]  ;;  %p3283_p0 = scmp.ne.s32.totalorder %s3110_s13, %s3282_s14  ;;  %p3288_p2 = scmp.lt.s32.totalorder %s3282_s14, %s3282_s14 }
  0x3d   :  { %1479 = vmatmul.mubr.f32.vlgmr.msra.gmra.mrb[12].mxu0 %v305_v63  ;;  %v346_v39 = vrot.slane %v332_v31, %v3367_v24  ;;  %v73_v40 = vld [vmem:[%s3868_s1 + $0x138] sm:$0xff]  ;;  %v25_v42 = vld [vmem:[%s3867_s0 + $0x48] sm:$0xff]  ;;  %v3184_v43 = vpack.c.bf16 %v138_v33, %v66_v32  ;;  %v3188_v44 = vpack.c.bf16 %v140_v35, %v68_v34  ;;  %v3190_v46 = vpack.c.bf16 %v143_v38, %v71_v37  ;;  %v70_v50 = vld [vmem:[%s3868_s1 + $0x120] sm:$0xff] }
  0x3e   :  { %1549 = vmatmul.mubr.f32.vlgmr.msra.gmra.mrb[12].mxu1 %v312_v2  ;;  %3177 = vmatpush1.bf16.xpose.msra.mxu0 %v3176_v25  ;;  %v145_v41 = vld [vmem:[%s3868_s1 + $0x378] sm:$0xff]  ;;  %v347_v45 = vcombine.high %v339_v36, %v339_v36  ;;  %v349_v49 = vcombine.high %v25_v42, %v25_v42  ;;  %v142_v51 = vld [vmem:[%s3868_s1 + $0x360] sm:$0xff]  ;;  %v72_v52 = vld [vmem:[%s3868_s1 + $0x130] sm:$0xff]  ;;  %v356_v54 = vrot.slane %v25_v42, %v3367_v24  ;;  %p3289_p3 = por %p3288_p2, %p3287_p1 }
  0x3f   :  { %3181 = vmatpush1.bf16.xpose.msra.mxu1 %v3180_v26  ;;  %1618 = vmatprep.mubr.f32.mxu0 %v330_v27  ;;  %v348_v47 = vcombine.high %v346_v39, %v346_v39  ;;  %v3194_v48 = vpack.c.bf16 %v145_v41, %v73_v40  ;;  %v144_v53 = vld [vmem:[%s3868_s1 + $0x370] sm:$0xff]  ;;  %v75_v55 = vld [vmem:[%s3868_s1 + $0x148] sm:$0xff]  ;;  %v77_v58 = vld [vmem:[%s3868_s1 + $0x158] sm:$0xff]  ;;  %v3192_v61 = vpack.c.bf16 %v142_v51, %v70_v50 }
  0x40   :  { %3183 = vmatprep.subr.bf16.mxu0 %v3182_v28  ;;  %1688 = vmatprep.mubr.f32.mxu1 %v331_v29  ;;  %v147_v56 = vld [vmem:[%s3868_s1 + $0x388] sm:$0xff]  ;;  %v363_v57 = vrot.slane %v349_v49, %v3367_v24  ;;  %v149_v59 = vld [vmem:[%s3868_s1 + $0x398] sm:$0xff]  ;;  %v26_v60 = vld [vmem:[%s3867_s0 + $0x50] sm:$0xff]  ;;  %v3196_v62 = vpack.c.bf16 %v144_v53, %v72_v52  ;;  %v364_v63 = vcombine.high %v356_v54, %v356_v54  ;;  %p3290_p4 = pnand %p3289_p3, %p3283_p0 }
  0x41   :  { %3187 = vmatprep.subr.bf16.mxu1 %v3186_v30  ;;  %v3198_v0 = vpack.c.bf16 %v147_v56, %v75_v55  ;;  %v3202_v2 = vpack.c.bf16 %v149_v59, %v77_v58  ;;  %v366_v3 = vcombine.high %v26_v60, %v26_v60  ;;  %v74_v4 = vld [vmem:[%s3868_s1 + $0x140] sm:$0xff]  ;;  %v76_v6 = vld [vmem:[%s3868_s1 + $0x150] sm:$0xff]  ;;  %v373_v8 = vrot.slane %v26_v60, %v3367_v24  ;;  %v79_v9 = vld [vmem:[%s3868_s1 + $0x168] sm:$0xff] }
  0x42   :  { %v365_v1 = vcombine.high %v363_v57, %v363_v57  ;;  %v146_v5 = vld [vmem:[%s3868_s1 + $0x380] sm:$0xff]  ;;  %v148_v7 = vld [vmem:[%s3868_s1 + $0x390] sm:$0xff]  ;;  %v151_v10 = vld [vmem:[%s3868_s1 + $0x3a8] sm:$0xff] }
  0x43   :  { %v380_v11 = vrot.slane %v366_v3, %v3367_v24  ;;  %v81_v12 = vld [vmem:[%s3868_s1 + $0x178] sm:$0xff]  ;;  %v3200_v15 = vpack.c.bf16 %v146_v5, %v74_v4  ;;  %v3204_v16 = vpack.c.bf16 %v148_v7, %v76_v6  ;;  %v3206_v18 = vpack.c.bf16 %v151_v10, %v79_v9  ;;  %v78_v22 = vld [vmem:[%s3868_s1 + $0x160] sm:$0xff]  ;;  %v80_v25 = vld [vmem:[%s3868_s1 + $0x170] sm:$0xff] }
  0x44   :  { %v153_v13 = vld [vmem:[%s3868_s1 + $0x3b8] sm:$0xff]  ;;  %v150_v23 = vld [vmem:[%s3868_s1 + $0x3a0] sm:$0xff]  ;;  %v152_v26 = vld [vmem:[%s3868_s1 + $0x3b0] sm:$0xff] }
  0x45   :  { %1619 = vmatmul.mubr.f32.vlgmr.msra.gmra.mrb[14].mxu0 %v322_v17  ;;  %v27_v14 = vld [vmem:[%s3867_s0 + $0x58] sm:$0xff]  ;;  %v381_v17 = vcombine.high %v373_v8, %v373_v8  ;;  %v382_v19 = vcombine.high %v380_v11, %v380_v11  ;;  %v83_v28 = vld [vmem:[%s3868_s1 + $0x188] sm:$0xff]  ;;  %v28_v33 = vld [vmem:[%s3867_s0 + $0x60] sm:$0xff]  ;;  %v3208_v34 = vpack.c.bf16 %v150_v23, %v78_v22  ;;  %v3212_v35 = vpack.c.bf16 %v152_v26, %v80_v25 }
  0x46   :  { %1689 = vmatmul.mubr.f32.vlgmr.msra.gmra.mrb[14].mxu1 %v329_v20  ;;  %3185 = vmatpush1.bf16.xpose.msra.mxu0 %v3184_v43  ;;  %v3210_v20 = vpack.c.bf16 %v153_v13, %v81_v12  ;;  %v383_v21 = vcombine.high %v27_v14, %v27_v14  ;;  %v390_v27 = vrot.slane %v27_v14, %v3367_v24  ;;  %v155_v29 = vld [vmem:[%s3868_s1 + $0x3c8] sm:$0xff]  ;;  %v85_v31 = vld [vmem:[%s3868_s1 + $0x198] sm:$0xff]  ;;  %v82_v41 = vld [vmem:[%s3868_s1 + $0x180] sm:$0xff] }
  0x47   :  { %3189 = vmatpush1.bf16.xpose.msra.mxu1 %v3188_v44  ;;  %1758 = vmatprep.mubr.f32.mxu0 %v347_v45  ;;  %v157_v32 = vld [vmem:[%s3868_s1 + $0x3d8] sm:$0xff]  ;;  %v3214_v37 = vpack.c.bf16 %v155_v29, %v83_v28  ;;  %v400_v40 = vcombine.high %v28_v33, %v28_v33  ;;  %v154_v42 = vld [vmem:[%s3868_s1 + $0x3c0] sm:$0xff]  ;;  %v84_v43 = vld [vmem:[%s3868_s1 + $0x190] sm:$0xff]  ;;  %v407_v45 = vrot.slane %v28_v33, %v3367_v24 }
  0x48   :  { %3191 = vmatprep.subr.bf16.mxu0 %v3190_v46  ;;  %1828 = vmatprep.mubr.f32.mxu1 %v348_v47  ;;  %v397_v30 = vrot.slane %v383_v21, %v3367_v24  ;;  %v156_v44 = vld [vmem:[%s3868_s1 + $0x3d0] sm:$0xff]  ;;  %v87_v46 = vld [vmem:[%s3868_s1 + $0x1a8] sm:$0xff]  ;;  %v89_v49 = vld [vmem:[%s3868_s1 + $0x1b8] sm:$0xff]  ;;  %v3216_v52 = vpack.c.bf16 %v154_v42, %v82_v41 }
  0x49   :  { %3195 = vmatprep.subr.bf16.mxu1 %v3194_v48  ;;  %v159_v47 = vld [vmem:[%s3868_s1 + $0x3e8] sm:$0xff]  ;;  %v414_v48 = vrot.slane %v400_v40, %v3367_v24  ;;  %v161_v50 = vld [vmem:[%s3868_s1 + $0x3f8] sm:$0xff]  ;;  %v3220_v53 = vpack.c.bf16 %v156_v44, %v84_v43  ;;  %v86_v59 = vld [vmem:[%s3868_s1 + $0x1a0] sm:$0xff] }
  0x4a   :  { %v399_v38 = vcombine.high %v397_v30, %v397_v30  ;;  %v29_v51 = vld [vmem:[%s3867_s0 + $0x68] sm:$0xff]  ;;  %v3222_v55 = vpack.c.bf16 %v159_v47, %v87_v46  ;;  %v158_v60 = vld [vmem:[%s3868_s1 + $0x3e0] sm:$0xff]  ;;  %v93_v3 = vld [vmem:[%s3868_s1 + $0x1d8] sm:$0xff] }
  0x4b   :  { %v416_v56 = vcombine.high %v414_v48, %v414_v48  ;;  %v417_v58 = vcombine.high %v29_v51, %v29_v51  ;;  %v165_v4 = vld [vmem:[%s3868_s1 + $0x418] sm:$0xff]  ;;  %v30_v5 = vld [vmem:[%s3867_s0 + $0x70] sm:$0xff]  ;;  %v3224_v6 = vpack.c.bf16 %v158_v60, %v86_v59  ;;  %v90_v13 = vld [vmem:[%s3868_s1 + $0x1c0] sm:$0xff] }
  0x4c   :  { %v434_v12 = vcombine.high %v30_v5, %v30_v5  ;;  %v162_v14 = vld [vmem:[%s3868_s1 + $0x400] sm:$0xff]  ;;  %v97_v21 = vld [vmem:[%s3868_s1 + $0x1f8] sm:$0xff] }
  0x4d   :  { %1759 = vmatmul.mubr.f32.vlgmr.msra.gmra.mrb[16].mxu0 %v339_v36  ;;  %v398_v36 = vcombine.high %v390_v27, %v390_v27  ;;  %v169_v22 = vld [vmem:[%s3868_s1 + $0x438] sm:$0xff]  ;;  %v3232_v25 = vpack.c.bf16 %v162_v14, %v90_v13  ;;  %v166_v33 = vld [vmem:[%s3868_s1 + $0x420] sm:$0xff] }
  0x4e   :  { %1829 = vmatmul.mubr.f32.vlgmr.msra.gmra.mrb[16].mxu1 %v346_v39  ;;  %3193 = vmatpush1.bf16.xpose.msra.mxu0 %v3192_v61  ;;  %v3218_v39 = vpack.c.bf16 %v157_v32, %v85_v31  ;;  %v88_v61 = vld [vmem:[%s3868_s1 + $0x1b0] sm:$0xff]  ;;  %v31_v23 = vld [vmem:[%s3867_s0 + $0x78] sm:$0xff]  ;;  %v94_v32 = vld [vmem:[%s3868_s1 + $0x1e0] sm:$0xff] }
  0x4f   :  { %3197 = vmatpush1.bf16.xpose.msra.mxu1 %v3196_v62  ;;  %1898 = vmatprep.mubr.f32.mxu0 %v364_v63  ;;  %v160_v62 = vld [vmem:[%s3868_s1 + $0x3f0] sm:$0xff]  ;;  %v424_v63 = vrot.slane %v29_v51, %v3367_v24  ;;  %v451_v31 = vcombine.high %v31_v23, %v31_v23  ;;  %v101_v40 = vld [vmem:[%s3868_s1 + $0x218] sm:$0xff]  ;;  %v32_v42 = vld [vmem:[%s3867_s0 + $0x80] sm:$0xff]  ;;  %v3240_v43 = vpack.c.bf16 %v166_v33, %v94_v32 }
  0x50   :  { %3199 = vmatprep.subr.bf16.mxu0 %v3198_v0  ;;  %1968 = vmatprep.mubr.f32.mxu1 %v365_v1  ;;  %v91_v0 = vld [vmem:[%s3868_s1 + $0x1c8] sm:$0xff]  ;;  %v3228_v7 = vpack.c.bf16 %v160_v62, %v88_v61  ;;  %v173_v41 = vld [vmem:[%s3868_s1 + $0x458] sm:$0xff]  ;;  %v170_v51 = vld [vmem:[%s3868_s1 + $0x440] sm:$0xff] }
  0x51   :  { %3203 = vmatprep.subr.bf16.mxu1 %v3202_v2  ;;  %v163_v1 = vld [vmem:[%s3868_s1 + $0x408] sm:$0xff]  ;;  %v431_v2 = vrot.slane %v417_v58, %v3367_v24  ;;  %v105_v59 = vld [vmem:[%s3868_s1 + $0x238] sm:$0xff] }
  0x52   :  { %v3230_v9 = vpack.c.bf16 %v163_v1, %v91_v0  ;;  %v33_v58 = vld [vmem:[%s3867_s0 + $0x88] sm:$0xff]  ;;  %v177_v60 = vld [vmem:[%s3868_s1 + $0x478] sm:$0xff] }
  0x53   :  { %v433_v10 = vcombine.high %v431_v2, %v431_v2  ;;  %v485_v1 = vcombine.high %v33_v58, %v33_v58 }
  0x55   :  { %1899 = vmatmul.mubr.f32.vlgmr.msra.gmra.mrb[18].mxu0 %v356_v54  ;;  %v415_v54 = vcombine.high %v407_v45, %v407_v45 }
  0x56   :  { %1969 = vmatmul.mubr.f32.vlgmr.msra.gmra.mrb[18].mxu1 %v363_v57  ;;  %3201 = vmatpush1.bf16.xpose.msra.mxu0 %v3200_v15  ;;  %v3226_v57 = vpack.c.bf16 %v161_v50, %v89_v49  ;;  %v92_v15 = vld [vmem:[%s3868_s1 + $0x1d0] sm:$0xff]  ;;  %v468_v49 = vcombine.high %v32_v42, %v32_v42  ;;  %v98_v50 = vld [vmem:[%s3868_s1 + $0x200] sm:$0xff] }
  0x57   :  { %3205 = vmatpush1.bf16.xpose.msra.mxu1 %v3204_v16  ;;  %2038 = vmatprep.mubr.f32.mxu0 %v381_v17  ;;  %v164_v16 = vld [vmem:[%s3868_s1 + $0x410] sm:$0xff]  ;;  %v441_v17 = vrot.slane %v30_v5, %v3367_v24  ;;  %v3248_v61 = vpack.c.bf16 %v170_v51, %v98_v50  ;;  %v174_v5 = vld [vmem:[%s3868_s1 + $0x460] sm:$0xff] }
  0x58   :  { %3207 = vmatprep.subr.bf16.mxu0 %v3206_v18  ;;  %2108 = vmatprep.mubr.f32.mxu1 %v382_v19  ;;  %v95_v18 = vld [vmem:[%s3868_s1 + $0x1e8] sm:$0xff]  ;;  %v3236_v26 = vpack.c.bf16 %v164_v16, %v92_v15 }
  0x59   :  { %3211 = vmatprep.subr.bf16.mxu1 %v3210_v20  ;;  %v167_v19 = vld [vmem:[%s3868_s1 + $0x428] sm:$0xff]  ;;  %v448_v20 = vrot.slane %v434_v12, %v3367_v24 }
  0x5a   :  { %v3238_v28 = vpack.c.bf16 %v167_v19, %v95_v18 }
  0x5b   :  { %v450_v29 = vcombine.high %v448_v20, %v448_v20 }
  0x5d   :  { %2039 = vmatmul.mubr.f32.vlgmr.msra.gmra.mrb[20].mxu0 %v373_v8  ;;  %v432_v8 = vcombine.high %v424_v63, %v424_v63 }
  0x5e   :  { %2109 = vmatmul.mubr.f32.vlgmr.msra.gmra.mrb[20].mxu1 %v380_v11  ;;  %3209 = vmatpush1.bf16.xpose.msra.mxu0 %v3208_v34  ;;  %v3234_v11 = vpack.c.bf16 %v165_v4, %v93_v3  ;;  %v96_v34 = vld [vmem:[%s3868_s1 + $0x1f0] sm:$0xff]  ;;  %v3258_v3 = vpack.c.bf16 %v177_v60, %v105_v59  ;;  %v102_v4 = vld [vmem:[%s3868_s1 + $0x220] sm:$0xff] }
  0x5f   :  { %3213 = vmatpush1.bf16.xpose.msra.mxu1 %v3212_v35  ;;  %2178 = vmatprep.mubr.f32.mxu0 %v398_v36  ;;  %v168_v35 = vld [vmem:[%s3868_s1 + $0x430] sm:$0xff]  ;;  %v458_v36 = vrot.slane %v31_v23, %v3367_v24 }
  0x60   :  { %3215 = vmatprep.subr.bf16.mxu0 %v3214_v37  ;;  %2248 = vmatprep.mubr.f32.mxu1 %v399_v38  ;;  %v99_v37 = vld [vmem:[%s3868_s1 + $0x208] sm:$0xff]  ;;  %v3244_v44 = vpack.c.bf16 %v168_v35, %v96_v34 }
  0x61   :  { %3219 = vmatprep.subr.bf16.mxu1 %v3218_v39  ;;  %v171_v38 = vld [vmem:[%s3868_s1 + $0x448] sm:$0xff]  ;;  %v465_v39 = vrot.slane %v451_v31, %v3367_v24 }
  0x62   :  { %v3246_v46 = vpack.c.bf16 %v171_v38, %v99_v37 }
  0x63   :  { %v467_v47 = vcombine.high %v465_v39, %v465_v39 }
  0x65   :  { %2179 = vmatmul.mubr.f32.vlgmr.msra.gmra.mrb[22].mxu0 %v390_v27  ;;  %v449_v27 = vcombine.high %v441_v17, %v441_v17 }
  0x66   :  { %2249 = vmatmul.mubr.f32.vlgmr.msra.gmra.mrb[22].mxu1 %v397_v30  ;;  %3217 = vmatpush1.bf16.xpose.msra.mxu0 %v3216_v52  ;;  %v3242_v30 = vpack.c.bf16 %v169_v22, %v97_v21  ;;  %v100_v52 = vld [vmem:[%s3868_s1 + $0x210] sm:$0xff] }
  0x67   :  { %3221 = vmatpush1.bf16.xpose.msra.mxu1 %v3220_v53  ;;  %2318 = vmatprep.mubr.f32.mxu0 %v415_v54  ;;  %v172_v53 = vld [vmem:[%s3868_s1 + $0x450] sm:$0xff]  ;;  %v475_v54 = vrot.slane %v32_v42, %v3367_v24 }
  0x68   :  { %3223 = vmatprep.subr.bf16.mxu0 %v3222_v55  ;;  %2388 = vmatprep.mubr.f32.mxu1 %v416_v56  ;;  %v103_v55 = vld [vmem:[%s3868_s1 + $0x228] sm:$0xff]  ;;  %v3252_v62 = vpack.c.bf16 %v172_v53, %v100_v52 }
  0x69   :  { %3227 = vmatprep.subr.bf16.mxu1 %v3226_v57  ;;  %v175_v56 = vld [vmem:[%s3868_s1 + $0x468] sm:$0xff]  ;;  %v482_v57 = vrot.slane %v468_v49, %v3367_v24 }
  0x6a   :  { %v3254_v0 = vpack.c.bf16 %v175_v56, %v103_v55 }
  0x6d   :  { %2319 = vmatmul.mubr.f32.vlgmr.msra.gmra.mrb[24].mxu0 %v407_v45  ;;  %v466_v45 = vcombine.high %v458_v36, %v458_v36 }
  0x6e   :  { %2389 = vmatmul.mubr.f32.vlgmr.msra.gmra.mrb[24].mxu1 %v414_v48  ;;  %3225 = vmatpush1.bf16.xpose.msra.mxu0 %v3224_v6  ;;  %v3250_v48 = vpack.c.bf16 %v173_v41, %v101_v40  ;;  %v104_v6 = vld [vmem:[%s3868_s1 + $0x230] sm:$0xff] }
  0x6f   :  { %3229 = vmatpush1.bf16.xpose.msra.mxu1 %v3228_v7  ;;  %2458 = vmatprep.mubr.f32.mxu0 %v432_v8  ;;  %v176_v7 = vld [vmem:[%s3868_s1 + $0x470] sm:$0xff]  ;;  %v492_v8 = vrot.slane %v33_v58, %v3367_v24 }
  0x70   :  { %3231 = vmatprep.subr.bf16.mxu0 %v3230_v9  ;;  %2528 = vmatprep.mubr.f32.mxu1 %v433_v10  ;;  %v499_v9 = vrot.slane %v485_v1, %v3367_v24  ;;  %v3256_v10 = vpack.c.bf16 %v174_v5, %v102_v4 }
  0x71   :  { %3235 = vmatprep.subr.bf16.mxu1 %v3234_v11  ;;  %v3260_v11 = vpack.c.bf16 %v176_v7, %v104_v6  ;;  %v500_v12 = vcombine.high %v492_v8, %v492_v8 }
  0x72   :  { %v501_v13 = vcombine.high %v499_v9, %v499_v9 }
  0x75   :  { %2459 = vmatmul.mubr.f32.vlgmr.msra.gmra.mrb[26].mxu0 %v424_v63  ;;  %v483_v63 = vcombine.high %v475_v54, %v475_v54 }
  0x76   :  { %2529 = vmatmul.mubr.f32.vlgmr.msra.gmra.mrb[26].mxu1 %v431_v2  ;;  %3233 = vmatpush1.bf16.xpose.msra.mxu0 %v3232_v25  ;;  %v484_v2 = vcombine.high %v482_v57, %v482_v57 }
  0x77   :  { %3237 = vmatpush1.bf16.xpose.msra.mxu1 %v3236_v26  ;;  %2598 = vmatprep.mubr.f32.mxu0 %v449_v27 }
  0x78   :  { %3239 = vmatprep.subr.bf16.mxu0 %v3238_v28  ;;  %2668 = vmatprep.mubr.f32.mxu1 %v450_v29 }
  0x79   :  { %3243 = vmatprep.subr.bf16.mxu1 %v3242_v30 }
  0x7d   :  { %2599 = vmatmul.mubr.f32.vlgmr.msra.gmra.mrb[28].mxu0 %v441_v17 }
  0x7e   :  { %2669 = vmatmul.mubr.f32.vlgmr.msra.gmra.mrb[28].mxu1 %v448_v20  ;;  %3241 = vmatpush1.bf16.xpose.msra.mxu0 %v3240_v43 }
  0x7f   :  { %3245 = vmatpush1.bf16.xpose.msra.mxu1 %v3244_v44  ;;  %2738 = vmatprep.mubr.f32.mxu0 %v466_v45 }
  0x80   :  { %3247 = vmatprep.subr.bf16.mxu0 %v3246_v46  ;;  %2808 = vmatprep.mubr.f32.mxu1 %v467_v47 }
  0x81   :  { %3251 = vmatprep.subr.bf16.mxu1 %v3250_v48 }
  0x85   :  { %2739 = vmatmul.mubr.f32.vlgmr.msra.gmra.mrb[30].mxu0 %v458_v36 }
  0x86   :  { %2809 = vmatmul.mubr.f32.vlgmr.msra.gmra.mrb[30].mxu1 %v465_v39  ;;  %3249 = vmatpush1.bf16.xpose.msra.mxu0 %v3248_v61 }
  0x87   :  { %3253 = vmatpush1.bf16.xpose.msra.mxu1 %v3252_v62  ;;  %2878 = vmatprep.mubr.f32.mxu0 %v483_v63 }
  0x88   :  { %3255 = vmatprep.subr.bf16.mxu0 %v3254_v0  ;;  %2948 = vmatprep.mubr.f32.mxu1 %v484_v2 }
  0x89   :  { %3259 = vmatprep.subr.bf16.mxu1 %v3258_v3 }
  0x8d   :  { %2879 = vmatmul.mubr.f32.vlgmr.msra.gmra.mrb[32].mxu0 %v475_v54 }
  0x8e   :  { %2949 = vmatmul.mubr.f32.vlgmr.msra.gmra.mrb[32].mxu1 %v482_v57  ;;  %3257 = vmatpush1.bf16.xpose.msra.mxu0 %v3256_v10 }
  0x8f   :  { %3261 = vmatpush1.bf16.xpose.msra.mxu1 %v3260_v11  ;;  %3018 = vmatprep.mubr.f32.mxu0 %v500_v12 }
  0x90   :  { %3088 = vmatprep.mubr.f32.mxu1 %v501_v13 }
  0x95   :  { %3019 = vmatmul.mubr.f32.vlgmr.msra.gmra.mrb[34].mxu0 %v492_v8 }
  0x96   :  { %3089 = vmatmul.mubr.f32.vlgmr.msra.gmra.mrb[34].mxu1 %v499_v9 }
  0xe0   :  { %v640_v14 = vpop.f32.mrb[0].mxu0 }
  0xe1   :  { %v710_v15 = vpop.f32.mrb[0].mxu1  ;;  %v642_v17 = vpop.f32.mrb[1].mxu0 }
  0xe2   :  { %v711_v16 = vadd.f32 %v710_v15, %v640_v14  ;;  %v712_v18 = vpop.f32.mrb[1].mxu1 }
  0xe8   :  { %v780_v24 = vpop.f32.mrb[2].mxu0 }
  0xe9   :  { %v850_v19 = vpop.f32.mrb[2].mxu1  ;;  %v781_v20 = vadd.f32 %v780_v24, %v711_v16  ;;  %v782_v21 = vpop.f32.mrb[3].mxu0 }
  0xea   :  { %v852_v22 = vpop.f32.mrb[3].mxu1 }
  0xeb   :  { %v851_v23 = vadd.f32 %v850_v19, %v781_v20 }
  0xf0   :  { %v920_v25 = vpop.f32.mrb[4].mxu0 }
  0xf1   :  { %v990_v26 = vpop.f32.mrb[4].mxu1  ;;  %v921_v27 = vadd.f32 %v920_v25, %v851_v23  ;;  %v922_v28 = vpop.f32.mrb[5].mxu0 }
  0xf2   :  { %v992_v29 = vpop.f32.mrb[5].mxu1 }
  0xf3   :  { %v991_v30 = vadd.f32 %v990_v26, %v921_v27 }
  0xf8   :  { %v1060_v31 = vpop.f32.mrb[6].mxu0 }
  0xf9   :  { %v1130_v32 = vpop.f32.mrb[6].mxu1  ;;  %v1061_v33 = vadd.f32 %v1060_v31, %v991_v30  ;;  %v1062_v34 = vpop.f32.mrb[7].mxu0 }
  0xfa   :  { %v1132_v35 = vpop.f32.mrb[7].mxu1 }
  0xfb   :  { %v1131_v36 = vadd.f32 %v1130_v32, %v1061_v33 }
 0x100   :  { %v1200_v37 = vpop.f32.mrb[8].mxu0 }
 0x101   :  { %v1270_v38 = vpop.f32.mrb[8].mxu1  ;;  %v1201_v39 = vadd.f32 %v1200_v37, %v1131_v36  ;;  %v1202_v40 = vpop.f32.mrb[9].mxu0 }
 0x102   :  { %v1272_v41 = vpop.f32.mrb[9].mxu1 }
 0x103   :  { %v1271_v42 = vadd.f32 %v1270_v38, %v1201_v39 }
 0x108   :  { %v1340_v43 = vpop.f32.mrb[10].mxu0 }
 0x109   :  { %v1410_v44 = vpop.f32.mrb[10].mxu1  ;;  %v1341_v45 = vadd.f32 %v1340_v43, %v1271_v42  ;;  %v1342_v46 = vpop.f32.mrb[11].mxu0 }
 0x10a   :  { %v1412_v47 = vpop.f32.mrb[11].mxu1 }
 0x10b   :  { %v1411_v48 = vadd.f32 %v1410_v44, %v1341_v45 }
 0x110   :  { %v1480_v49 = vpop.f32.mrb[12].mxu0 }
 0x111   :  { %v1550_v50 = vpop.f32.mrb[12].mxu1  ;;  %v1481_v51 = vadd.f32 %v1480_v49, %v1411_v48  ;;  %v1482_v52 = vpop.f32.mrb[13].mxu0 }
 0x112   :  { %v1552_v53 = vpop.f32.mrb[13].mxu1 }
 0x113   :  { %v1551_v54 = vadd.f32 %v1550_v50, %v1481_v51 }
 0x118   :  { %v1620_v55 = vpop.f32.mrb[14].mxu0 }
 0x119   :  { %v1690_v56 = vpop.f32.mrb[14].mxu1  ;;  %v1621_v57 = vadd.f32 %v1620_v55, %v1551_v54  ;;  %v1622_v58 = vpop.f32.mrb[15].mxu0 }
 0x11a   :  { %v1692_v59 = vpop.f32.mrb[15].mxu1 }
 0x11b   :  { %v1691_v60 = vadd.f32 %v1690_v56, %v1621_v57  ;;  %v3117_v56 = vld [vmem:[%s3869_s2] ss:$0 sm:$0xff] }
 0x120   :  { %v1760_v61 = vpop.f32.mrb[16].mxu0 }
 0x121   :  { %v1830_v62 = vpop.f32.mrb[16].mxu1  ;;  %v1761_v63 = vadd.f32 %v1760_v61, %v1691_v60  ;;  %v1762_v0 = vpop.f32.mrb[17].mxu0 }
 0x122   :  { %v1832_v1 = vpop.f32.mrb[17].mxu1 }
 0x123   :  { %v1831_v2 = vadd.f32 %v1830_v62, %v1761_v63 }
 0x128   :  { %v1900_v3 = vpop.f32.mrb[18].mxu0 }
 0x129   :  { %v1970_v4 = vpop.f32.mrb[18].mxu1  ;;  %v1901_v5 = vadd.f32 %v1900_v3, %v1831_v2  ;;  %v1902_v6 = vpop.f32.mrb[19].mxu0 }
 0x12a   :  { %v1972_v7 = vpop.f32.mrb[19].mxu1 }
 0x12b   :  { %v1971_v8 = vadd.f32 %v1970_v4, %v1901_v5 }
 0x130   :  { %v2040_v9 = vpop.f32.mrb[20].mxu0 }
 0x131   :  { %v2110_v10 = vpop.f32.mrb[20].mxu1  ;;  %v2041_v11 = vadd.f32 %v2040_v9, %v1971_v8  ;;  %v2042_v12 = vpop.f32.mrb[21].mxu0 }
 0x132   :  { %v2112_v13 = vpop.f32.mrb[21].mxu1 }
 0x133   :  { %v2111_v14 = vadd.f32 %v2110_v10, %v2041_v11 }
 0x138   :  { %v2180_v15 = vpop.f32.mrb[22].mxu0 }
 0x139   :  { %v2250_v16 = vpop.f32.mrb[22].mxu1  ;;  %v2181_v17 = vadd.f32 %v2180_v15, %v2111_v14  ;;  %v2182_v18 = vpop.f32.mrb[23].mxu0 }
 0x13a   :  { %v2252_v24 = vpop.f32.mrb[23].mxu1 }
 0x13b   :  { %v2251_v19 = vadd.f32 %v2250_v16, %v2181_v17 }
 0x140   :  { %v2320_v20 = vpop.f32.mrb[24].mxu0 }
 0x141   :  { %v2390_v21 = vpop.f32.mrb[24].mxu1  ;;  %v2321_v22 = vadd.f32 %v2320_v20, %v2251_v19  ;;  %v2322_v23 = vpop.f32.mrb[25].mxu0 }
 0x142   :  { %v2392_v25 = vpop.f32.mrb[25].mxu1 }
 0x143   :  { %v2391_v26 = vadd.f32 %v2390_v21, %v2321_v22 }
 0x148   :  { %v2460_v27 = vpop.f32.mrb[26].mxu0 }
 0x149   :  { %v2530_v28 = vpop.f32.mrb[26].mxu1  ;;  %v2461_v29 = vadd.f32 %v2460_v27, %v2391_v26  ;;  %v2462_v30 = vpop.f32.mrb[27].mxu0 }
 0x14a   :  { %v2532_v31 = vpop.f32.mrb[27].mxu1 }
 0x14b   :  { %v2531_v32 = vadd.f32 %v2530_v28, %v2461_v29 }
 0x150   :  { %v2600_v33 = vpop.f32.mrb[28].mxu0 }
 0x151   :  { %v2670_v34 = vpop.f32.mrb[28].mxu1  ;;  %v2601_v35 = vadd.f32 %v2600_v33, %v2531_v32  ;;  %v2602_v36 = vpop.f32.mrb[29].mxu0 }
 0x152   :  { %v2672_v37 = vpop.f32.mrb[29].mxu1 }
 0x153   :  { %v2671_v38 = vadd.f32 %v2670_v34, %v2601_v35 }
 0x158   :  { %v2740_v39 = vpop.f32.mrb[30].mxu0 }
 0x159   :  { %v2810_v40 = vpop.f32.mrb[30].mxu1  ;;  %v2741_v41 = vadd.f32 %v2740_v39, %v2671_v38  ;;  %v2742_v42 = vpop.f32.mrb[31].mxu0 }
 0x15a   :  { %v2812_v43 = vpop.f32.mrb[31].mxu1 }
 0x15b   :  { %v2811_v44 = vadd.f32 %v2810_v40, %v2741_v41 }
 0x160   :  { %v2880_v45 = vpop.f32.mrb[32].mxu0 }
 0x161   :  { %v2950_v46 = vpop.f32.mrb[32].mxu1  ;;  %v2881_v47 = vadd.f32 %v2880_v45, %v2811_v44  ;;  %v2882_v48 = vpop.f32.mrb[33].mxu0 }
 0x162   :  { %v2952_v49 = vpop.f32.mrb[33].mxu1 }
 0x163   :  { %v2951_v50 = vadd.f32 %v2950_v46, %v2881_v47 }
 0x168   :  { %v3020_v51 = vpop.f32.mrb[34].mxu0 }
 0x169   :  { %v3090_v52 = vpop.f32.mrb[34].mxu1  ;;  %v3021_v53 = vadd.f32 %v3020_v51, %v2951_v50  ;;  %v3022_v54 = vpop.f32.mrb[35].mxu0 }
 0x16a   :  { %v3092_v55 = vpop.f32.mrb[35].mxu1 }
 0x16b   :  { %v3091_v57 = vadd.f32 %v3090_v52, %v3021_v53 }
 0x16d   :  { %v3100_v58 = vadd.f32 %v3117_v56, %v3091_v57 }
 0x16f   :  { %3102 = vst.msk [vmem:[#allocation2] sm:$0x3] %vm3101_vm0, %v3100_v58 }
 0x170   :  { %3293 = shalt.err (!%p3290_p4)
}
 0x171   :  { %s3294_s17 = scalar_lea.hbm %s3870_s3, 32 }
 0x172   :  { %p3295_p5 = scmp.ne.s32.totalorder %s3870_s3, %s3294_s17  ;;  %p3298_p6 = scmp.lt.u32.totalorder %s3294_s17, %s3870_s3 }
 0x174   :  { %p3300_p7 = pnand %p3298_p6, %p3295_p5 }
 0x176   :  { %3303 = shalt.err (!%p3300_p7)
}
 0x177   :  { %3112 = dma.vmem_to_hbm [thread:$0]  %s3110_s13, 32, %s3870_s3, [#allocation3]  }
 0x178   :  { %3304 = dma.done.wait [#allocation3], 32  }
 0x179   :  { %3305 = vsyncadd [#allocation3], 4294967264 }
 0x17a   :  { %3116 = vsyncpa [#allocation3], 1 }

</bundles_post_ra>
